<compile_context>
chip_gen: v7x
topology: tpu7x:2x2x1
jax: 0.10.0
libtpu: 0.0.40
codegen_flags: <defaults>
</compile_context>

<pallas_src>
import functools

import jax
import jax.numpy as jnp
from jax import lax
from jax.experimental import pallas as pl
from jax.experimental.pallas import tpu as pltpu

NEG_INF = -1e30  # value used to mask padded class columns (never wins argmax)


def _round_up(v, m):
    return ((v + m - 1) // m) * m


def _score_counts_kernel(logits_ref, targets_ref, counts_ref, *, num_classes):
    """Accumulates per-class counts for one (TILE_N, C_pad) tile.

    counts_ref (8, C_pad) rows:
      0 = TP, 1 = predicted-count (TP+FP), 2 = support (TP+FN), 3..7 = zero pad.
    One such accumulator per core (leading grid axis).
    """
    # Zero this core's accumulator at its first tile.
    @pl.when(pl.program_id(1) == 0)
    def _():
        counts_ref[...] = jnp.zeros_like(counts_ref)

    x = logits_ref[...]                 # (TILE_N, C_pad) float
    t = targets_ref[...]                # (TILE_N, 1)     int32
    tile_n, c_pad = x.shape

    cls = lax.broadcasted_iota(jnp.int32, (tile_n, c_pad), 1)

    # Mask padded class columns so they never win the argmax.
    # NOTE: no log-softmax -- argmax(log_softmax(x)) == argmax(x).
    xm = jnp.where(cls < num_classes, x, jnp.asarray(NEG_INF, x.dtype))

    # argmax over classes, first-occurrence tie-break (torch.argmax semantics).
    mx = jnp.max(xm, axis=-1, keepdims=True)
    pred = jnp.min(jnp.where(xm == mx, cls, c_pad), axis=-1, keepdims=True)

    valid = t >= 0                      # padded rows carry t == -1
    pred_oh = (cls == pred) & valid     # (TILE_N, C_pad)
    targ_oh = (cls == t) & valid        # (TILE_N, C_pad)

    tp = jnp.sum((pred_oh & targ_oh).astype(jnp.float32), axis=0, keepdims=True)
    pc = jnp.sum(pred_oh.astype(jnp.float32), axis=0, keepdims=True)
    sup = jnp.sum(targ_oh.astype(jnp.float32), axis=0, keepdims=True)

    counts_ref[0:1, :] = counts_ref[0:1, :] + tp
    counts_ref[1:2, :] = counts_ref[1:2, :] + pc
    counts_ref[2:3, :] = counts_ref[2:3, :] + sup


def score_pallas(logits, targets, method="macro"):
    """Pallas implementation of Score_.forward for the argmax branch
    (inputs.shape != targets.shape => preds = argmax(log_softmax(inputs), -1)).

    logits : (..., C) float  — class scores
    targets: (...)    int    — ground-truth class ids in [0, C)
    Returns dict {'P','R','F1'} of scalar jnp.float32.
    """
    # TODO(synk): the PyTorch `inputs.shape == targets.shape` branch (inputs are
    # already class ids) is not routed through the kernel.
    C = logits.shape[-1]
    x = logits.reshape(-1, C)
    if not jnp.issubdtype(x.dtype, jnp.floating):
        x = x.astype(jnp.float32)
    t = targets.reshape(-1).astype(jnp.int32)
    N = x.shape[0]

    itemsize = jnp.dtype(x.dtype).itemsize
    C_pad = _round_up(max(C, 128), 128)

    # Row tile: ~<= 4 MiB of logits per tile, at most 512 rows, at least 8.
    rows_budget = max(8, (4 * 1024 * 1024) // (C_pad * itemsize))
    TILE_N = min((rows_budget // 8) * 8, 512, _round_up(max(N, 8), 8))
    TILE_N = max(TILE_N, 8)

    total_tiles = (max(N, 1) + TILE_N - 1) // TILE_N
    # Split tiles across 2 TensorCores (v7x megacore); harmless on 1-TC chips.
    NUM_CORES = 2 if total_tiles >= 2 else 1
    tiles_per_core = _round_up(total_tiles, NUM_CORES) // NUM_CORES
    N_pad = NUM_CORES * tiles_per_core * TILE_N

    # Zero-pad only; padded class columns are masked inside the kernel and
    # padded rows are masked via target == -1 (no NEG_INF-filled HBM copy).
    x_p = jnp.pad(x, ((0, N_pad - N), (0, C_pad - C)))
    t_p = jnp.pad(t, (0, N_pad - N), constant_values=-1).reshape(N_pad, 1)

    kernel = functools.partial(_score_counts_kernel, num_classes=C)

    cost = pl.CostEstimate(
        flops=int(10 * N_pad * C_pad),
        transcendentals=0,
        bytes_accessed=int(N_pad * C_pad * itemsize + N_pad * 4
                           + NUM_CORES * 8 * C_pad * 4),
    )

    counts = pl.pallas_call(
        kernel,
        out_shape=jax.ShapeDtypeStruct((NUM_CORES, 8, C_pad), jnp.float32),
        grid=(NUM_CORES, tiles_per_core),
        in_specs=[
            pl.BlockSpec((TILE_N, C_pad),
                         lambda c, i: (c * tiles_per_core + i, 0)),
            pl.BlockSpec((TILE_N, 1),
                         lambda c, i: (c * tiles_per_core + i, 0)),
        ],
        out_specs=pl.BlockSpec((None, 8, C_pad), lambda c, i: (c, 0, 0)),
        compiler_params=pltpu.CompilerParams(
            dimension_semantics=("parallel", "arbitrary")),
        cost_estimate=cost,
    )(x_p, t_p)

    counts = jnp.sum(counts, axis=0)        # sum per-core partials -> (8, C_pad)
    tp = counts[0, :C]
    pred_count = counts[1, :C]
    sup = counts[2, :C]
    fp = pred_count - tp                    # predicted k but target != k
    fn = sup - tp                           # target k but predicted != k

    # "label set" = classes actually present in the targets (PyTorch uses a
    # Python set; here it's a presence mask over all C classes).
    present = sup > 0
    present_f = present.astype(jnp.float32)
    # Guard against 0 valid rows (PyTorch would divide by zero / crash).
    n_labels = jnp.maximum(jnp.sum(present_f), jnp.float32(1.0))
    eps = jnp.float32(1e-31)

    if method == "micro":
        # TODO(synk): PyTorch raises KeyError if a prediction falls outside the
        # target label set; here such FP counts are simply dropped (masked).
        TP = jnp.sum(jnp.where(present, tp, 0.0))
        FP = jnp.sum(jnp.where(present, fp, 0.0))
        FN = jnp.sum(jnp.where(present, fn, 0.0))
        P = TP / (TP + FP + eps)
        R = TP / (TP + FN + eps)
        F1 = 2.0 * (P * R) / (P + R + eps)
        return {"P": P, "R": R, "F1": F1}

    # macro (default)
    P = tp / (tp + fp + eps)
    R = tp / (tp + fn + eps)
    F1 = 2.0 * (P * R) / (P + R + eps)
    return {
        "P": jnp.sum(P * present_f) / n_labels,
        "R": jnp.sum(R * present_f) / n_labels,
        "F1": jnp.sum(F1 * present_f) / n_labels,
    }


if __name__ == "__main__":
    key = jax.random.PRNGKey(0)
    k_logits, k_targets = jax.random.split(key)

    # small shapes consistent with the module: batch=2, seq=8, num_classes=5
    B, S, C = 2, 8, 5
    logits = jax.random.normal(k_logits, (B, S, C), dtype=jnp.float32)
    targets = jax.random.randint(k_targets, (B, S), 0, C, dtype=jnp.int32)

    out_macro = score_pallas(logits, targets, method="macro")
    out_micro = score_pallas(logits, targets, method="micro")

    jax.block_until_ready(out_macro["F1"])
    jax.block_until_ready(out_micro["F1"])

    print("KERNEL_OK")
</pallas_src>

<mosaic_0001>
module attributes {stable_mosaic.version = 11 : i64} {
  func.func @_score_counts_kernel(%arg0: i32, %arg1: i32, %arg2: memref<16x128xf32, #tpu.memory_space<vmem>>, %arg3: memref<16x1xi32, #tpu.memory_space<vmem>>, %arg4: memref<1x8x128xf32, #tpu.memory_space<vmem>>) attributes {dimension_semantics = [#tpu.dimension_semantics<parallel>, #tpu.dimension_semantics<arbitrary>], iteration_bounds = array<i64: 1, 1>, scalar_prefetch = 0 : i64, scratch_operands = 0 : i64, tpu.core_type = #tpu.core_type<tc>, window_params = [{transform_indices = @transform_0, window_bounds = array<i64: 16, 128>}, {transform_indices = @transform_1, window_bounds = array<i64: 16, 1>}, {transform_indices = @transform_2, window_bounds = array<i64: 1, 8, 128>}]} {
    %c0_i32 = arith.constant 0 : i32
    %0 = arith.cmpi eq, %arg1, %c0_i32 : i32
    %1 = arith.extui %0 : i1 to i32
    %c0_i32_0 = arith.constant 0 : i32
    %2 = arith.cmpi ne, %1, %c0_i32_0 : i32
    scf.if %2 {
      %cst_26 = arith.constant 0.000000e+00 : f32
      %59 = vector.broadcast %cst_26 : f32 to vector<8x128xf32>
      %c0_27 = arith.constant 0 : index
      %c0_28 = arith.constant 0 : index
      %c0_29 = arith.constant 0 : index
      %60 = vector.load %arg4[%c0_27, %c0_28, %c0_29] : memref<1x8x128xf32, #tpu.memory_space<vmem>>, vector<1x8x128xf32>
      %61 = vector.shape_cast %60 : vector<1x8x128xf32> to vector<8x128xf32>
      %62 = vector.shape_cast %59 : vector<8x128xf32> to vector<1x8x128xf32>
      tpu.vector_store %arg4[%c0_27, %c0_28, %c0_29], %62 {strides = array<i32>} : memref<1x8x128xf32, #tpu.memory_space<vmem>>, vector<1x8x128xf32>,
    } else {
    }
    %c0 = arith.constant 0 : index
    %c0_1 = arith.constant 0 : index
    %3 = vector.load %arg2[%c0, %c0_1] : memref<16x128xf32, #tpu.memory_space<vmem>>, vector<16x128xf32>
    %c0_2 = arith.constant 0 : index
    %c0_3 = arith.constant 0 : index
    %4 = vector.load %arg3[%c0_2, %c0_3] : memref<16x1xi32, #tpu.memory_space<vmem>>, vector<16x1xi32>
    %5 = tpu.iota {dimensions = array<i32: 1>} : vector<16x128xi32>
    %c5_i32 = arith.constant 5 : i32
    %6 = vector.broadcast %c5_i32 : i32 to vector<16x128xi32>
    %7 = arith.cmpi slt, %5, %6 : vector<16x128xi32>
    %cst = arith.constant -1.000000e+30 : f32
    %8 = vector.broadcast %cst : f32 to vector<16x128xf32>
    %9 = arith.select %7, %3, %8 : vector<16x128xi1>, vector<16x128xf32>
    %cst_4 = arith.constant dense<0xFF800000> : vector<16xf32>
    %10 = vector.multi_reduction <maximumf>, %9, %cst_4 [1] : vector<16x128xf32> to vector<16xf32>
    %11 = vector.shape_cast %10 : vector<16xf32> to vector<16x1xf32>
    %12 = vector.broadcast %11 : vector<16x1xf32> to vector<16x128xf32>
    %13 = arith.cmpf oeq, %9, %12 : vector<16x128xf32>
    %c128_i32 = arith.constant 128 : i32
    %14 = vector.broadcast %c128_i32 : i32 to vector<16x128xi32>
    %15 = arith.select %13, %5, %14 : vector<16x128xi1>, vector<16x128xi32>
    %cst_5 = arith.constant dense<2147483647> : vector<16xi32>
    %16 = vector.multi_reduction <minsi>, %15, %cst_5 [1] : vector<16x128xi32> to vector<16xi32>
    %17 = vector.shape_cast %16 : vector<16xi32> to vector<16x1xi32>
    %c0_i32_6 = arith.constant 0 : i32
    %18 = vector.broadcast %c0_i32_6 : i32 to vector<16x1xi32>
    %19 = arith.cmpi sge, %4, %18 : vector<16x1xi32>
    %20 = vector.broadcast %17 : vector<16x1xi32> to vector<16x128xi32>
    %21 = arith.cmpi eq, %5, %20 : vector<16x128xi32>
    %22 = vector.broadcast %19 : vector<16x1xi1> to vector<16x128xi1>
    %23 = arith.andi %21, %22 : vector<16x128xi1>
    %24 = vector.broadcast %4 : vector<16x1xi32> to vector<16x128xi32>
    %25 = arith.cmpi eq, %5, %24 : vector<16x128xi32>
    %26 = vector.broadcast %19 : vector<16x1xi1> to vector<16x128xi1>
    %27 = arith.andi %25, %26 : vector<16x128xi1>
    %28 = arith.andi %23, %27 : vector<16x128xi1>
    %29 = arith.extui %28 : vector<16x128xi1> to vector<16x128xi32>
    %30 = arith.sitofp %29 : vector<16x128xi32> to vector<16x128xf32>
    %cst_7 = arith.constant dense<0.000000e+00> : vector<128xf32>
    %31 = vector.multi_reduction <add>, %30, %cst_7 [0] : vector<16x128xf32> to vector<128xf32>
    %32 = vector.shape_cast %31 : vector<128xf32> to vector<1x128xf32>
    %33 = arith.extui %23 : vector<16x128xi1> to vector<16x128xi32>
    %34 = arith.sitofp %33 : vector<16x128xi32> to vector<16x128xf32>
    %cst_8 = arith.constant dense<0.000000e+00> : vector<128xf32>
    %35 = vector.multi_reduction <add>, %34, %cst_8 [0] : vector<16x128xf32> to vector<128xf32>
    %36 = vector.shape_cast %35 : vector<128xf32> to vector<1x128xf32>
    %37 = arith.extui %27 : vector<16x128xi1> to vector<16x128xi32>
    %38 = arith.sitofp %37 : vector<16x128xi32> to vector<16x128xf32>
    %cst_9 = arith.constant dense<0.000000e+00> : vector<128xf32>
    %39 = vector.multi_reduction <add>, %38, %cst_9 [0] : vector<16x128xf32> to vector<128xf32>
    %40 = vector.shape_cast %39 : vector<128xf32> to vector<1x128xf32>
    %c0_10 = arith.constant 0 : index
    %c0_11 = arith.constant 0 : index
    %c0_12 = arith.constant 0 : index
    %41 = vector.load %arg4[%c0_10, %c0_11, %c0_12] : memref<1x8x128xf32, #tpu.memory_space<vmem>>, vector<1x1x128xf32>
    %42 = vector.shape_cast %41 : vector<1x1x128xf32> to vector<1x128xf32>
    %43 = arith.addf %42, %32 : vector<1x128xf32>
    %c0_13 = arith.constant 0 : index
    %c0_14 = arith.constant 0 : index
    %c0_15 = arith.constant 0 : index
    %44 = vector.load %arg4[%c0_13, %c0_14, %c0_15] : memref<1x8x128xf32, #tpu.memory_space<vmem>>, vector<1x1x128xf32>
    %45 = vector.shape_cast %44 : vector<1x1x128xf32> to vector<1x128xf32>
    %46 = vector.shape_cast %43 : vector<1x128xf32> to vector<1x1x128xf32>
    tpu.vector_store %arg4[%c0_13, %c0_14, %c0_15], %46 {strides = array<i32>} : memref<1x8x128xf32, #tpu.memory_space<vmem>>, vector<1x1x128xf32>,
    %c0_16 = arith.constant 0 : index
    %c1 = arith.constant 1 : index
    %c0_17 = arith.constant 0 : index
    %47 = vector.load %arg4[%c0_16, %c1, %c0_17] : memref<1x8x128xf32, #tpu.memory_space<vmem>>, vector<1x1x128xf32>
    %48 = vector.shape_cast %47 : vector<1x1x128xf32> to vector<1x128xf32>
    %49 = arith.addf %48, %36 : vector<1x128xf32>
    %c0_18 = arith.constant 0 : index
    %c1_19 = arith.constant 1 : index
    %c0_20 = arith.constant 0 : index
    %50 = vector.load %arg4[%c0_18, %c1_19, %c0_20] : memref<1x8x128xf32, #tpu.memory_space<vmem>>, vector<1x1x128xf32>
    %51 = vector.shape_cast %50 : vector<1x1x128xf32> to vector<1x128xf32>
    %52 = vector.shape_cast %49 : vector<1x128xf32> to vector<1x1x128xf32>
    tpu.vector_store %arg4[%c0_18, %c1_19, %c0_20], %52 {strides = array<i32>} : memref<1x8x128xf32, #tpu.memory_space<vmem>>, vector<1x1x128xf32>,
    %c0_21 = arith.constant 0 : index
    %c2 = arith.constant 2 : index
    %c0_22 = arith.constant 0 : index
    %53 = vector.load %arg4[%c0_21, %c2, %c0_22] : memref<1x8x128xf32, #tpu.memory_space<vmem>>, vector<1x1x128xf32>
    %54 = vector.shape_cast %53 : vector<1x1x128xf32> to vector<1x128xf32>
    %55 = arith.addf %54, %40 : vector<1x128xf32>
    %c0_23 = arith.constant 0 : index
    %c2_24 = arith.constant 2 : index
    %c0_25 = arith.constant 0 : index
    %56 = vector.load %arg4[%c0_23, %c2_24, %c0_25] : memref<1x8x128xf32, #tpu.memory_space<vmem>>, vector<1x1x128xf32>
    %57 = vector.shape_cast %56 : vector<1x1x128xf32> to vector<1x128xf32>
    %58 = vector.shape_cast %55 : vector<1x128xf32> to vector<1x1x128xf32>
    tpu.vector_store %arg4[%c0_23, %c2_24, %c0_25], %58 {strides = array<i32>} : memref<1x8x128xf32, #tpu.memory_space<vmem>>, vector<1x1x128xf32>,
    return
  }
  func.func @transform_0(%arg0: i32, %arg1: i32) -> (i32, i32) {
    %c1_i32 = arith.constant 1 : i32
    %0 = arith.muli %arg0, %c1_i32 : i32
    %1 = arith.addi %0, %arg1 : i32
    %c0_i32 = arith.constant 0 : i32
    %c0_i32_0 = arith.constant 0 : i32
    return %1, %c0_i32 : i32, i32
  }
  func.func @transform_1(%arg0: i32, %arg1: i32) -> (i32, i32) {
    %c1_i32 = arith.constant 1 : i32
    %0 = arith.muli %arg0, %c1_i32 : i32
    %1 = arith.addi %0, %arg1 : i32
    %c0_i32 = arith.constant 0 : i32
    %c0_i32_0 = arith.constant 0 : i32
    return %1, %c0_i32 : i32, i32
  }
  func.func @transform_2(%arg0: i32, %arg1: i32) -> (i32, i32, i32) {
    %c0_i32 = arith.constant 0 : i32
    %c0_i32_0 = arith.constant 0 : i32
    %c0_i32_1 = arith.constant 0 : i32
    return %arg0, %c0_i32, %c0_i32_0 : i32, i32, i32
  }
}

</mosaic_0001>

<bundles_post_ra>
// kernel: tpu_custom_call.1
= control target key start
LH: loop header
LB: loop body
LE: loop exit
PB: predicated region body
PF: predicated region fallthrough
CT: control target
= control target key end

     0   :  { %v65_v0 = vlaneseq  ;;  %s288_s0 = inlined_call_operand.vmem [shape: f32[16,128], index: 0, kind: input, shape index: {}]   ;;  %s289_s1 = inlined_call_operand.vmem [shape: s32[16,1], index: 1, kind: input, shape index: {}]   ;;  %s290_s2 = inlined_call_operand.hbm [shape: f32[1,8,128], index: 2, kind: output, shape index: {}]  }
   0x1   :  { %7 = vsyncpa [#allocation3], 0  ;;  %v61_v1 = vld [vmem:[%s288_s0] sm:$0xff]  ;;  %v62_v3 = vld [vmem:[%s288_s0 + $0x8] sm:$0xff]  ;;  %v237_v6 = vmov 0   ;;  %v238_v27 = vmov 0.0  }
   0x2   :  { %v258_v2 = vand.u32 127, %v65_v0  ;;  %212 = vset.pattern.permute.xlu1 %v237_v6  ;;  %211 = vset.pattern.permute.xlu0 %v237_v6  ;;  %v64_v15 = vld [vmem:[%s289_s1 + $0x8] sm:$0xff]  ;;  %v63_v17 = vld [vmem:[%s289_s1] sm:$0xff]  ;;  %60 = vst [vmem:[#allocation2] sm:$0xff] %v238_v27  ;;  %s239_s1 = smov [#allocation2]  }
   0x3   :  { %vm107_vm3 = vcmp.ge.s32.totalorder %v64_v15, 0  ;;  %vm106_vm6 = vcmp.ge.s32.totalorder %v63_v17, 0  ;;  %s182_s16 = sshll.u32 %s239_s1, 4  ;;  %s183_s16 = int_to_ptr.vmem [resolvable:$true] %s182_s16 }
   0x4   :  { %vm67_vm0 = vcmp.lt.s32.totalorder %v258_v2, 5  ;;  %v111_v16 = vsel %vm107_vm3, 1, %v237_v6  ;;  %v110_v26 = vsel %vm106_vm6, 1, %v237_v6  ;;  %s213_s17 = scalar_lea.vmem %s183_s16, 128  ;;  %p218_p1 = scmp.lt.s32.totalorder %s183_s16, %s183_s16 }
   0x5   :  { %v68_v4 = vsel %vm67_vm0, %v61_v1, -1e+30  ;;  %v69_v5 = vsel %vm67_vm0, %v62_v3, -1e+30  ;;  %p214_p0 = scmp.ne.s32.totalorder %s183_s16, %s213_s17  ;;  %p219_p2 = scmp.lt.s32.totalorder %s213_s17, %s213_s17 }
   0x6   :  { %70 = vmax.xlane.f32.xlu0 %v68_v4 }
   0x7   :  { %p220_p3 = por %p219_p2, %p218_p1 }
   0x9   :  { %v170_v1 = vld [vmem:[#allocation2 + $0x1] sm:$0x1]  ;;  %v167_v6 = vld [vmem:[#allocation2] sm:$0x1]  ;;  %p221_p4 = pnand %p220_p3, %p214_p0 }
   0xa   :  { %72 = vmax.xlane.f32.xlu0 %v69_v5 }
  0x93   :  { %v71_v7 = vpop.xlane.xlu0 %70 }
  0x94   :  { %vm74_vm1 = vcmp.eq.f32.partialorder %v68_v4, %v71_v7  ;;  %v173_v4 = vld [vmem:[#allocation2 + $0x2] sm:$0x1] }
  0x95   :  { %v76_v8 = vsel %vm74_vm1, %v258_v2, 128 }
  0x96   :  { %v79_v9 = vshra.s32 %v76_v8, 16  ;;  %v78_v18 = vand.u32 65535, %v76_v8 }
  0x97   :  { %v73_v10 = vpop.xlane.xlu0 %72 }
  0x98   :  { %vm75_vm2 = vcmp.eq.f32.partialorder %v69_v5, %v73_v10  ;;  %v81_v11 = vcvt.s32.f32 %v79_v9  ;;  %v80_v21 = vcvt.s32.f32 %v78_v18 }
  0x99   :  { %v77_v12 = vsel %vm75_vm2, %v258_v2, 128 }
  0x9a   :  { %82 = vmin.xlane.f32.xlu1 %v81_v11  ;;  %v93_v13 = vshra.s32 %v77_v12, 16  ;;  %v92_v19 = vand.u32 65535, %v77_v12 }
  0x9c   :  { %v95_v14 = vcvt.s32.f32 %v93_v13  ;;  %v94_v24 = vcvt.s32.f32 %v92_v19 }
  0x9e   :  { %96 = vmin.xlane.f32.xlu1 %v95_v14 }
  0xaf   :  { %116 = vperm.xlu1 %212, %v111_v16  }
  0xb3   :  { %123 = vperm.xlu1 %212, %v63_v17  }
 0x127   :  { %v83_v20 = vpop.xlane.xlu1 %82 }
 0x128   :  { %vm84_vm4 = vcmp.eq.f32.partialorder %v81_v11, %v83_v20  ;;  %v89_v32 = vcvt.f32.s32 %v83_v20 }
 0x129   :  { %v85_v22 = vsel %vm84_vm4, %v80_v21, inf }
 0x12a   :  { %86 = vmin.xlane.f32.xlu0 %v85_v22  ;;  %v90_v37 = vshll.u32 %v89_v32, 16 }
 0x12b   :  { %v97_v23 = vpop.xlane.xlu1 %96 }
 0x12c   :  { %vm98_vm5 = vcmp.eq.f32.partialorder %v95_v14, %v97_v23  ;;  %v103_v30 = vcvt.f32.s32 %v97_v23 }
 0x12d   :  { %v99_v25 = vsel %vm98_vm5, %v94_v24, inf }
 0x12e   :  { %100 = vmin.xlane.f32.xlu1 %v99_v25  ;;  %v104_v35 = vshll.u32 %v103_v30, 16 }
 0x12f   :  { %v117_v28 = vpop.permute.xlu1 %116 }
 0x130   :  { %vm119_vm7 = vcmp.eq.s32.totalorder %v117_v28, 1 }
 0x133   :  { %v124_v29 = vpop.permute.xlu1 %123 }
 0x134   :  { %vm128_vm15 = vcmp.eq.s32.totalorder %v258_v2, %v124_v29 }
 0x13f   :  { %126 = vperm.xlu1 %212, %v64_v15  }
 0x140   :  { %113 = vperm.xlu0 %211, %v110_v26  }
 0x1b7   :  { %v87_v31 = vpop.xlane.xlu0 %86 }
 0x1b8   :  { %v88_v33 = vcvt.f32.s32 %v87_v31 }
 0x1ba   :  { %v91_v39 = vadd.s32 %v90_v37, %v88_v33 }
 0x1bb   :  { %v101_v34 = vpop.xlane.xlu1 %100 }
 0x1bc   :  { %v102_v36 = vcvt.f32.s32 %v101_v34  ;;  %vm108_vm14 = vcmp.eq.s32.totalorder %v258_v2, %v91_v39 }
 0x1be   :  { %v105_v38 = vadd.s32 %v104_v35, %v102_v36 }
 0x1bf   :  { %v127_v40 = vpop.permute.xlu1 %126  ;;  %v114_v41 = vpop.permute.xlu0 %113 }
 0x1c0   :  { %vm109_vm8 = vcmp.eq.s32.totalorder %v258_v2, %v105_v38  ;;  %vm129_vm9 = vcmp.eq.s32.totalorder %v258_v2, %v127_v40  ;;  %vm118_vm11 = vcmp.eq.s32.totalorder %v114_v41, 1 }
 0x1c1   :  { %vm121_vm10 = vmand %vm109_vm8, %vm119_vm7 }
 0x1c2   :  { %vm131_vm12 = vmand %vm129_vm9, %vm119_vm7  ;;  %v205_v42 = vsel %vm121_vm10, 1.0, %v238_v27 }
 0x1c3   :  { %vm133_vm13 = vmand %vm121_vm10, %vm131_vm12  ;;  %v207_v43 = vsel %vm131_vm12, 1.0, %v238_v27 }
 0x1c4   :  { %vm120_vm0 = vmand %vm108_vm14, %vm118_vm11  ;;  %v203_v44 = vsel %vm133_vm13, 1.0, %v238_v27 }
 0x1c5   :  { %vm130_vm1 = vmand %vm128_vm15, %vm118_vm11  ;;  %v204_v45 = vsel %vm120_vm0, 1.0, %v238_v27 }
 0x1c6   :  { %vm132_vm2 = vmand %vm120_vm0, %vm130_vm1  ;;  %v149_v46 = vadd.f32 %v205_v42, %v204_v45  ;;  %v206_v47 = vsel %vm130_vm1, 1.0, %v238_v27 }
 0x1c7   :  { %v202_v48 = vsel %vm132_vm2, 1.0, %v238_v27  ;;  %v160_v49 = vadd.f32 %v207_v43, %v206_v47 }
 0x1c8   :  { %v138_v50 = vadd.f32 %v203_v44, %v202_v48  ;;  %v150_v51 = vrot.slane %v149_v46, 4 }
 0x1c9   :  { %v161_v52 = vrot.slane %v160_v49, 4 }
 0x1ca   :  { %v139_v53 = vrot.slane %v138_v50, 4  ;;  %v151_v54 = vadd.f32 %v150_v51, %v149_v46 }
 0x1cb   :  { %v162_v55 = vadd.f32 %v161_v52, %v160_v49 }
 0x1cc   :  { %v140_v56 = vadd.f32 %v139_v53, %v138_v50  ;;  %v152_v57 = vrot.slane %v151_v54, 2 }
 0x1cd   :  { %v163_v58 = vrot.slane %v162_v55, 2 }
 0x1ce   :  { %v141_v59 = vrot.slane %v140_v56, 2  ;;  %v153_v60 = vadd.f32 %v152_v57, %v151_v54 }
 0x1cf   :  { %v164_v61 = vadd.f32 %v163_v58, %v162_v55 }
 0x1d0   :  { %v142_v62 = vadd.f32 %v141_v59, %v140_v56  ;;  %v154_v63 = vrot.slane %v153_v60, 1 }
 0x1d1   :  { %v165_v0 = vrot.slane %v164_v61, 1 }
 0x1d2   :  { %v143_v2 = vrot.slane %v142_v62, 1  ;;  %v155_v3 = vadd.f32 %v154_v63, %v153_v60 }
 0x1d3   :  { %v166_v5 = vadd.f32 %v165_v0, %v164_v61 }
 0x1d4   :  { %v144_v7 = vadd.f32 %v143_v2, %v142_v62  ;;  %v171_v8 = vadd.f32 %v170_v1, %v155_v3 }
 0x1d5   :  { %v174_v9 = vadd.f32 %v173_v4, %v166_v5 }
 0x1d6   :  { %172 = vst [vmem:[#allocation2 + $0x1] sm:$0x1] %v171_v8  ;;  %v168_v10 = vadd.f32 %v167_v6, %v144_v7 }
 0x1d7   :  { %175 = vst [vmem:[#allocation2 + $0x2] sm:$0x1] %v174_v9 }
 0x1d8   :  { %169 = vst [vmem:[#allocation2] sm:$0x1] %v168_v10 }
 0x1d9   :  { %224 = shalt.err (!%p221_p4)
}
 0x1da   :  { %s225_s20 = scalar_lea.hbm %s290_s2, 128 }
 0x1db   :  { %p226_p5 = scmp.ne.s32.totalorder %s290_s2, %s225_s20  ;;  %p229_p6 = scmp.lt.u32.totalorder %s225_s20, %s290_s2 }
 0x1dd   :  { %p231_p7 = pnand %p229_p6, %p226_p5 }
 0x1df   :  { %234 = shalt.err (!%p231_p7)
}
 0x1e0   :  { %185 = dma.vmem_to_hbm [thread:$0]  %s183_s16, 128, %s290_s2, [#allocation3]  }
 0x1e1   :  { %235 = dma.done.wait [#allocation3], 128  }
 0x1e2   :  { %236 = vsyncadd [#allocation3], 4294967168 }
 0x1e3   :  { %189 = vsyncpa [#allocation3], 1 }

</bundles_post_ra>
